<compile_context>
chip_gen: v7x
topology: tpu7x:2x2x1
jax: 0.10.0
libtpu: 0.0.40
codegen_flags: <defaults>
</compile_context>

<pallas_src>
import math
import functools

import numpy as np
import jax
import jax.numpy as jnp
from jax.experimental import pallas as pl
from jax.experimental.pallas import tpu as pltpu

DEFAULT_SCALE_CLAMP = math.log(1000.0 / 16)

CFG = dict(
    stride=8,
    anchor_size=[[16.0, 16.0], [32.0, 32.0], [64.0, 64.0],
                 [128.0, 128.0], [256.0, 256.0]],
    encoder_dim=32,
    backbone_dim=16,
    ctr_clamp=32.0,
)
NUM_CLASSES = 20
NUM_ANCHORS = len(CFG["anchor_size"])

CLS_W = NUM_ANCHORS * NUM_CLASSES        # 100 : cls lanes 0..99
REG_W = NUM_ANCHORS * 4                  # 20  : box lanes 100..119
R1_OFF = CLS_W                           # 100 : (dx,dy,dx,dy) x 5 anchors
R2_OFF = 128 + CLS_W                     # 228 : (dw,dh,dw,dh) x 5 (lane-congruent with r1)
HEAD_W = 256                             # padded head width = 2 full lane tiles

TILE_R_CAP = 2048                        # rows per grid step at large R


def _round_up(v, m):
    return (v + m - 1) // m * m


def _cdiv(a, b):
    return (a + b - 1) // b


# ----------------------------------------------------------------------------
# Fused Pallas kernel: backbone patch-matmul -> neck -> heads -> box decode
# ----------------------------------------------------------------------------
def _fused_head_kernel(x_ref, ctr_ref, w1_ref, b1_ref, w2_ref, b2_ref,
                       wh_ref, bh_ref, lc_ref, cls_ref, box_ref, *, ctr_clamp):
    # --- matmul chain (bf16 operands, f32 accumulation, f32 elementwise) ----
    # NOTE: K/N of 16..256 under-utilize the MXU; the kernel is HBM-bound so
    # this is free.  Head width is padded to 256 so the result tile is unmasked.
    f = jnp.dot(x_ref[...], w1_ref[...],
                preferred_element_type=jnp.float32) + b1_ref[...]
    f = jnp.maximum(f, 0.0)                                     # backbone ReLU
    e = jnp.dot(f.astype(jnp.bfloat16), w2_ref[...],
                preferred_element_type=jnp.float32) + b2_ref[...]
    e = jnp.maximum(e, 0.0)                                     # encoder ReLU
    out = jnp.dot(e.astype(jnp.bfloat16), wh_ref[...],
                  preferred_element_type=jnp.float32) + bh_ref[...]   # [T, 256]

    t0 = out[:, :128]    # [ cls(100) | r1 = (dx,dy,dx,dy)x5 | 0pad ]  (vreg aligned)
    t1 = out[:, 128:]    # [ 0pad(100) | r2 = (dw,dh,dw,dh)x5 | 0pad ] lane-congruent

    # --- per-lane compile-time constants (tiny input, fetched once) --------
    sw = lc_ref[0:1, :]     # anchor w / h per lane
    ssw = lc_ref[1:2, :]    # (+-0.5) * anchor w/h (zero outside box lanes)
    isx = lc_ref[2:3, :]    # 1.0 on x lanes, 0.0 on y lanes

    # --- fused YOLOF.decode_boxes (full-width per-lane VPU math) -----------
    c = ctr_ref[...]                                            # [T, 2] = (cx, cy)
    axy = jnp.where(isx > 0.5, c[:, 0:1], c[:, 1:2])            # anchor cx / cy
    ctr = axy + jnp.clip(t0 * sw, -ctr_clamp, ctr_clamp)
    box = ctr + ssw * jnp.exp(jnp.minimum(t1, DEFAULT_SCALE_CLAMP))

    cls_ref[...] = t0[:, :CLS_W]                  # lanes 0..99, no relayout
    box_ref[...] = box[:, R1_OFF:R1_OFF + REG_W]  # lanes 100..119 -> one rotate


# ----------------------------------------------------------------------------
# Wrapper
# ----------------------------------------------------------------------------
def _pick_tile(R):
    if R >= 2 * TILE_R_CAP:
        return TILE_R_CAP
    if R >= 32:
        # exactly two tiles so both v7x TensorCores get work
        return min(_round_up(_cdiv(R, 2), 16), _round_up(R, 16))
    # tiny problem: a single block
    return R if (R % 8 == 0) else _round_up(R, 16)


def run_fused_head(x_patches_bf16, ctr_rows, params):
    R, P = x_patches_bf16.shape
    tile_r = _pick_tile(R)
    grid = (_cdiv(R, tile_r),)

    w1 = params["w1"].astype(jnp.bfloat16)
    w2 = params["w2"].astype(jnp.bfloat16)
    wh = params["w_head"].astype(jnp.bfloat16)
    b1, b2, bh = params["b1"], params["b2"], params["b_head"]
    lc = params["lane_const"]
    bk, enc = w1.shape[1], w2.shape[1]

    kernel = functools.partial(_fused_head_kernel,
                               ctr_clamp=float(CFG["ctr_clamp"]))

    full = lambda a: pl.BlockSpec(a.shape, lambda i: (0, 0))
    cls_flat, box_flat = pl.pallas_call(
        kernel,
        out_shape=(jax.ShapeDtypeStruct((R, CLS_W), jnp.float32),
                   jax.ShapeDtypeStruct((R, REG_W), jnp.float32)),
        grid=grid,
        in_specs=[pl.BlockSpec((tile_r, P), lambda i: (i, 0)),
                  pl.BlockSpec((tile_r, 2), lambda i: (i, 0)),
                  full(w1), full(b1), full(w2), full(b2),
                  full(wh), full(bh), full(lc)],
        out_specs=(pl.BlockSpec((tile_r, CLS_W), lambda i: (i, 0)),
                   pl.BlockSpec((tile_r, REG_W), lambda i: (i, 0))),
        compiler_params=pltpu.CompilerParams(
            dimension_semantics=("parallel",),
            vmem_limit_bytes=32 * 1024 * 1024),
        cost_estimate=pl.CostEstimate(
            flops=2 * R * (P * bk + bk * enc + enc * HEAD_W),
            transcendentals=R * 128,
            bytes_accessed=R * (P * 2 + 8 + (CLS_W + REG_W) * 4)),
    )(x_patches_bf16, ctr_rows, w1, b1, w2, b2, wh, bh, lc)
    return cls_flat, box_flat


def space_to_depth_bf16(x, s):
    """NCHW f32 -> [B*fh*fw, C*s*s] bf16 patch rows.

    The bf16 cast happens BEFORE the reshape/transpose so XLA fuses cast +
    transpose into one HBM pass that writes bf16 directly.
    """
    # TODO(synk): fold the patch extraction itself into the kernel's in_spec
    # (grid over (b, fh) with an NCHW block + in-VMEM relayout) to remove this
    # remaining HBM transpose pass entirely.
    B, C, H, W = x.shape
    fh, fw = H // s, W // s
    x = x.astype(jnp.bfloat16)
    x = x.reshape(B, C, fh, s, fw, s).transpose(0, 2, 4, 1, 3, 5)
    return x.reshape(B * fh * fw, C * s * s), (fh, fw)


def _anchor_centers_rows(batch, fmp_size, stride):
    fh, fw = fmp_size
    ys, xs = np.meshgrid(np.arange(fh), np.arange(fw), indexing="ij")
    ctr = (np.stack([xs, ys], axis=-1).reshape(-1, 2).astype(np.float32)
           + 0.5) * stride
    return jnp.asarray(np.tile(ctr, (batch, 1)))            # [B*fh*fw, 2]


def generate_anchors(fmp_size, stride, anchor_size):
    fh, fw = fmp_size
    ys, xs = jnp.meshgrid(jnp.arange(fh), jnp.arange(fw), indexing="ij")
    anchor_xy = (jnp.stack([xs, ys], axis=-1).reshape(-1, 2).astype(jnp.float32)
                 + 0.5) * stride                                   # [HW, 2]
    A = anchor_size.shape[0]
    anchor_xy = jnp.repeat(anchor_xy[:, None, :], A, axis=1)        # [HW, A, 2]
    anchor_wh = jnp.broadcast_to(anchor_size[None, :, :], (fh * fw, A, 2))
    anchors = jnp.concatenate([anchor_xy, anchor_wh], axis=-1)      # [HW, A, 4]
    return anchors.reshape(-1, 4)                                   # [M, 4]


def yolof_forward(x, params, mask=None):
    """Training-branch forward of YOLOF.  x: [B, C, H, W] (NCHW, float32)."""
    B = x.shape[0]
    s = CFG["stride"]
    xp, (fh, fw) = space_to_depth_bf16(x, s)
    hw = fh * fw
    ctr_rows = _anchor_centers_rows(B, (fh, fw), float(s))
    cls_flat, box_flat = run_fused_head(xp, ctr_rows, params)
    # free row-major reshapes (no extra HBM pass)
    cls_pred = cls_flat.reshape(B, hw * NUM_ANCHORS, NUM_CLASSES)
    box_pred = box_flat.reshape(B, hw * NUM_ANCHORS, 4)
    anchor_boxes = generate_anchors((fh, fw), s, params["anchor_size"])
    # TODO(synk): mask branch (F.interpolate of mask to fmp size) not implemented.
    return {"pred_cls": cls_pred, "pred_box": box_pred,
            "anchors": anchor_boxes, "mask": mask}


# ----------------------------------------------------------------------------
# Pure-JAX reference (mirrors the kernel's bf16-operand / f32-accum precision)
# ----------------------------------------------------------------------------
def ref_forward(x, params):
    B = x.shape[0]
    s = CFG["stride"]
    bf = jnp.bfloat16
    xp, (fh, fw) = space_to_depth_bf16(x, s)
    f = jnp.maximum(jnp.dot(xp, params["w1"].astype(bf),
                            preferred_element_type=jnp.float32) + params["b1"], 0.0)
    e = jnp.maximum(jnp.dot(f.astype(bf), params["w2"].astype(bf),
                            preferred_element_type=jnp.float32) + params["b2"], 0.0)
    cls_flat = jnp.dot(e.astype(bf), params["wc"].astype(bf),
                       preferred_element_type=jnp.float32) + params["bc"]
    reg_flat = jnp.dot(e.astype(bf), params["wr"].astype(bf),
                       preferred_element_type=jnp.float32) + params["br"]
    hw = fh * fw
    cls_pred = cls_flat.reshape(B, hw * NUM_ANCHORS, NUM_CLASSES)
    reg_pred = reg_flat.reshape(B, hw * NUM_ANCHORS, 4)
    anchors = generate_anchors((fh, fw), s, params["anchor_size"])
    anc = anchors[None]
    off = jnp.clip(reg_pred[..., :2] * anc[..., 2:],
                   -CFG["ctr_clamp"], CFG["ctr_clamp"])
    ctr = anc[..., :2] + off
    wh = anc[..., 2:] * jnp.exp(jnp.minimum(reg_pred[..., 2:], DEFAULT_SCALE_CLAMP))
    box = jnp.concatenate([ctr - 0.5 * wh, ctr + 0.5 * wh], axis=-1)
    return cls_pred, box, anchors


# ----------------------------------------------------------------------------
# Params
# ----------------------------------------------------------------------------
def _make_lane_consts():
    a = np.asarray(CFG["anchor_size"], np.float32)
    aw, ah = a[:, 0], a[:, 1]
    lane = np.arange(128)
    in_box = (lane >= R1_OFF) & (lane < R1_OFF + REG_W)
    rel = np.clip(lane - R1_OFF, 0, REG_W - 1)
    a_idx = rel // 4
    j_idx = rel % 4
    is_x = (j_idx % 2) == 0
    sw = np.where(is_x, aw[a_idx], ah[a_idx]).astype(np.float32)
    sgn = np.where(j_idx < 2, -0.5, 0.5).astype(np.float32)
    lc = np.zeros((8, 128), np.float32)
    lc[0] = sw                          # anchor w/h per lane
    lc[1] = sgn * sw * in_box           # (+-0.5)*w/h, zero outside box lanes
    lc[2] = is_x.astype(np.float32)     # x-lane selector
    return jnp.asarray(lc)


def make_params(key):
    s = CFG["stride"]
    c_in = 4
    p = c_in * s * s
    bk, enc = CFG["backbone_dim"], CFG["encoder_dim"]
    ks = jax.random.split(key, 8)
    scale = 0.05
    w1 = scale * jax.random.normal(ks[0], (p, bk), jnp.float32)
    b1 = scale * jax.random.normal(ks[1], (1, bk), jnp.float32)
    w2 = scale * jax.random.normal(ks[2], (bk, enc), jnp.float32)
    b2 = scale * jax.random.normal(ks[3], (1, enc), jnp.float32)
    wc = scale * jax.random.normal(ks[4], (enc, CLS_W), jnp.float32)
    bc = scale * jax.random.normal(ks[5], (1, CLS_W), jnp.float32)
    wr = scale * jax.random.normal(ks[6], (enc, REG_W), jnp.float32)
    br = scale * jax.random.normal(ks[7], (1, REG_W), jnp.float32)

    # Lane-permuted duplicates of the reg columns so the in-kernel decode is
    # pure per-lane math: r1 lanes 100..119 = (dx,dy,dx,dy), r2 lanes 228..247
    # = (dw,dh,dw,dh) -- same lane offset mod 128; head padded to 256 lanes.
    idx1 = np.array([4 * a + (j % 2) for a in range(NUM_ANCHORS) for j in range(4)])
    idx2 = idx1 + 2
    w_head = jnp.zeros((enc, HEAD_W), jnp.float32)
    w_head = w_head.at[:, :CLS_W].set(wc)
    w_head = w_head.at[:, R1_OFF:R1_OFF + REG_W].set(wr[:, idx1])
    w_head = w_head.at[:, R2_OFF:R2_OFF + REG_W].set(wr[:, idx2])
    b_head = jnp.zeros((1, HEAD_W), jnp.float32)
    b_head = b_head.at[:, :CLS_W].set(bc)
    b_head = b_head.at[:, R1_OFF:R1_OFF + REG_W].set(br[:, idx1])
    b_head = b_head.at[:, R2_OFF:R2_OFF + REG_W].set(br[:, idx2])

    return {
        "w1": w1, "b1": b1, "w2": w2, "b2": b2,
        "wc": wc, "bc": bc, "wr": wr, "br": br,
        "w_head": w_head, "b_head": b_head,
        "lane_const": _make_lane_consts(),
        "anchor_size": jnp.asarray(CFG["anchor_size"], jnp.float32),
    }


# ----------------------------------------------------------------------------
# Main
# ----------------------------------------------------------------------------
if __name__ == "__main__":
    key = jax.random.PRNGKey(0)
    k_param, k_x = jax.random.split(key)
    params = make_params(k_param)
    x = jax.random.normal(k_x, (2, 4, 16, 16), jnp.float32)   # NCHW

    out = jax.jit(lambda xx: yolof_forward(xx, params))(x)
    jax.block_until_ready(out["pred_box"])

    # correctness check against the pure-JAX reference
    ref_cls, ref_box, ref_anc = ref_forward(x, params)
    assert out["pred_cls"].shape == (2, 20, NUM_CLASSES)
    assert out["pred_box"].shape == (2, 20, 4)
    assert out["anchors"].shape == (20, 4)
    assert jnp.allclose(out["pred_cls"], ref_cls, rtol=1e-3, atol=1e-3)
    assert jnp.allclose(out["pred_box"], ref_box, rtol=1e-3, atol=1e-2)
    assert jnp.allclose(out["anchors"], ref_anc, rtol=1e-5, atol=1e-5)

    print("KERNEL_OK")
</pallas_src>

<mosaic_0001>
module attributes {stable_mosaic.version = 11 : i64} {
  func.func @_fused_head_kernel(%arg0: i32, %arg1: memref<8x256xbf16, #tpu.memory_space<vmem>>, %arg2: memref<8x2xf32, #tpu.memory_space<vmem>>, %arg3: memref<256x16xbf16, #tpu.memory_space<vmem>>, %arg4: memref<1x16xf32, #tpu.memory_space<vmem>>, %arg5: memref<16x32xbf16, #tpu.memory_space<vmem>>, %arg6: memref<1x32xf32, #tpu.memory_space<vmem>>, %arg7: memref<32x256xbf16, #tpu.memory_space<vmem>>, %arg8: memref<1x256xf32, #tpu.memory_space<vmem>>, %arg9: memref<8x128xf32, #tpu.memory_space<vmem>>, %arg10: memref<8x100xf32, #tpu.memory_space<vmem>>, %arg11: memref<8x20xf32, #tpu.memory_space<vmem>>) attributes {dimension_semantics = [#tpu.dimension_semantics<parallel>], iteration_bounds = array<i64: 1>, scalar_prefetch = 0 : i64, scratch_operands = 0 : i64, tpu.core_type = #tpu.core_type<tc>, window_params = [{transform_indices = @transform_0, window_bounds = array<i64: 8, 256>}, {transform_indices = @transform_1, window_bounds = array<i64: 8, 2>}, {pipeline_mode = #tpu.pipeline_mode<synchronous>, transform_indices = @transform_2, window_bounds = array<i64: 256, 16>}, {pipeline_mode = #tpu.pipeline_mode<synchronous>, transform_indices = @transform_3, window_bounds = array<i64: 1, 16>}, {pipeline_mode = #tpu.pipeline_mode<synchronous>, transform_indices = @transform_4, window_bounds = array<i64: 16, 32>}, {pipeline_mode = #tpu.pipeline_mode<synchronous>, transform_indices = @transform_5, window_bounds = array<i64: 1, 32>}, {pipeline_mode = #tpu.pipeline_mode<synchronous>, transform_indices = @transform_6, window_bounds = array<i64: 32, 256>}, {pipeline_mode = #tpu.pipeline_mode<synchronous>, transform_indices = @transform_7, window_bounds = array<i64: 1, 256>}, {pipeline_mode = #tpu.pipeline_mode<synchronous>, transform_indices = @transform_8, window_bounds = array<i64: 8, 128>}, {transform_indices = @transform_9, window_bounds = array<i64: 8, 100>}, {transform_indices = @transform_10, window_bounds = array<i64: 8, 20>}]} {
    %c0 = arith.constant 0 : index
    %c0_0 = arith.constant 0 : index
    %0 = vector.load %arg1[%c0, %c0_0] : memref<8x256xbf16, #tpu.memory_space<vmem>>, vector<8x256xbf16>
    %c0_1 = arith.constant 0 : index
    %c0_2 = arith.constant 0 : index
    %1 = vector.load %arg3[%c0_1, %c0_2] : memref<256x16xbf16, #tpu.memory_space<vmem>>, vector<256x16xbf16>
    %cst = arith.constant dense<0.000000e+00> : vector<8x16xf32>
    %2 = tpu.matmul %0, %1, %cst {dimension_numbers = #tpu.dot_dimension_numbers<[1], [0], [0], [1], [0, 0, 1, 1], [], []>} : vector<8x256xbf16>, vector<256x16xbf16>, vector<8x16xf32> -> vector<8x16xf32>
    %c0_3 = arith.constant 0 : index
    %c0_4 = arith.constant 0 : index
    %3 = vector.load %arg4[%c0_3, %c0_4] : memref<1x16xf32, #tpu.memory_space<vmem>>, vector<1x16xf32>
    %4 = vector.broadcast %3 : vector<1x16xf32> to vector<8x16xf32>
    %5 = arith.addf %2, %4 : vector<8x16xf32>
    %cst_5 = arith.constant 0.000000e+00 : f32
    %6 = vector.broadcast %cst_5 : f32 to vector<8x16xf32>
    %7 = arith.maximumf %5, %6 : vector<8x16xf32>
    %8 = arith.truncf %7 : vector<8x16xf32> to vector<8x16xbf16>
    %c0_6 = arith.constant 0 : index
    %c0_7 = arith.constant 0 : index
    %9 = vector.load %arg5[%c0_6, %c0_7] : memref<16x32xbf16, #tpu.memory_space<vmem>>, vector<16x32xbf16>
    %cst_8 = arith.constant dense<0.000000e+00> : vector<8x32xf32>
    %10 = tpu.matmul %8, %9, %cst_8 {dimension_numbers = #tpu.dot_dimension_numbers<[1], [0], [0], [1], [0, 0, 1, 1], [], []>} : vector<8x16xbf16>, vector<16x32xbf16>, vector<8x32xf32> -> vector<8x32xf32>
    %c0_9 = arith.constant 0 : index
    %c0_10 = arith.constant 0 : index
    %11 = vector.load %arg6[%c0_9, %c0_10] : memref<1x32xf32, #tpu.memory_space<vmem>>, vector<1x32xf32>
    %12 = vector.broadcast %11 : vector<1x32xf32> to vector<8x32xf32>
    %13 = arith.addf %10, %12 : vector<8x32xf32>
    %cst_11 = arith.constant 0.000000e+00 : f32
    %14 = vector.broadcast %cst_11 : f32 to vector<8x32xf32>
    %15 = arith.maximumf %13, %14 : vector<8x32xf32>
    %16 = arith.truncf %15 : vector<8x32xf32> to vector<8x32xbf16>
    %c0_12 = arith.constant 0 : index
    %c0_13 = arith.constant 0 : index
    %17 = vector.load %arg7[%c0_12, %c0_13] : memref<32x256xbf16, #tpu.memory_space<vmem>>, vector<32x256xbf16>
    %cst_14 = arith.constant dense<0.000000e+00> : vector<8x256xf32>
    %18 = tpu.matmul %16, %17, %cst_14 {dimension_numbers = #tpu.dot_dimension_numbers<[1], [0], [0], [1], [0, 0, 1, 1], [], []>} : vector<8x32xbf16>, vector<32x256xbf16>, vector<8x256xf32> -> vector<8x256xf32>
    %c0_15 = arith.constant 0 : index
    %c0_16 = arith.constant 0 : index
    %19 = vector.load %arg8[%c0_15, %c0_16] : memref<1x256xf32, #tpu.memory_space<vmem>>, vector<1x256xf32>
    %20 = vector.broadcast %19 : vector<1x256xf32> to vector<8x256xf32>
    %21 = arith.addf %18, %20 : vector<8x256xf32>
    %22 = vector.extract_strided_slice %21 {offsets = [0, 0], sizes = [8, 128], strides = [1, 1]} : vector<8x256xf32> to vector<8x128xf32>
    %23 = vector.extract_strided_slice %21 {offsets = [0, 128], sizes = [8, 128], strides = [1, 1]} : vector<8x256xf32> to vector<8x128xf32>
    %c0_17 = arith.constant 0 : index
    %c0_18 = arith.constant 0 : index
    %24 = vector.load %arg9[%c0_17, %c0_18] : memref<8x128xf32, #tpu.memory_space<vmem>>, vector<1x128xf32>
    %c1 = arith.constant 1 : index
    %c0_19 = arith.constant 0 : index
    %25 = vector.load %arg9[%c1, %c0_19] : memref<8x128xf32, #tpu.memory_space<vmem>>, vector<1x128xf32>
    %c2 = arith.constant 2 : index
    %c0_20 = arith.constant 0 : index
    %26 = vector.load %arg9[%c2, %c0_20] : memref<8x128xf32, #tpu.memory_space<vmem>>, vector<1x128xf32>
    %c0_21 = arith.constant 0 : index
    %c0_22 = arith.constant 0 : index
    %27 = vector.load %arg2[%c0_21, %c0_22] : memref<8x2xf32, #tpu.memory_space<vmem>>, vector<8x2xf32>
    %cst_23 = arith.constant 5.000000e-01 : f32
    %28 = vector.broadcast %cst_23 : f32 to vector<1x128xf32>
    %29 = arith.cmpf ogt, %26, %28 : vector<1x128xf32>
    %30 = vector.extract_strided_slice %27 {offsets = [0, 0], sizes = [8, 1], strides = [1, 1]} : vector<8x2xf32> to vector<8x1xf32>
    %31 = vector.extract_strided_slice %27 {offsets = [0, 1], sizes = [8, 1], strides = [1, 1]} : vector<8x2xf32> to vector<8x1xf32>
    %32 = vector.shape_cast %29 : vector<1x128xi1> to vector<1x128xi1>
    %33 = vector.broadcast %32 : vector<1x128xi1> to vector<8x128xi1>
    %34 = vector.shape_cast %30 : vector<8x1xf32> to vector<8x1xf32>
    %35 = vector.broadcast %34 : vector<8x1xf32> to vector<8x128xf32>
    %36 = vector.shape_cast %31 : vector<8x1xf32> to vector<8x1xf32>
    %37 = vector.broadcast %36 : vector<8x1xf32> to vector<8x128xf32>
    %38 = arith.select %33, %35, %37 : vector<8x128xi1>, vector<8x128xf32>
    %39 = vector.broadcast %24 : vector<1x128xf32> to vector<8x128xf32>
    %40 = arith.mulf %22, %39 : vector<8x128xf32>
    %cst_24 = arith.constant -3.200000e+01 : f32
    %cst_25 = arith.constant 3.200000e+01 : f32
    %41 = vector.broadcast %cst_24 : f32 to vector<8x128xf32>
    %42 = arith.maximumf %41, %40 : vector<8x128xf32>
    %43 = vector.broadcast %cst_25 : f32 to vector<8x128xf32>
    %44 = arith.minimumf %43, %42 : vector<8x128xf32>
    %45 = arith.addf %38, %44 : vector<8x128xf32>
    %cst_26 = arith.constant 4.13516665 : f32
    %46 = vector.broadcast %cst_26 : f32 to vector<8x128xf32>
    %47 = arith.minimumf %23, %46 : vector<8x128xf32>
    %48 = math.exp %47 : vector<8x128xf32>
    %49 = vector.broadcast %25 : vector<1x128xf32> to vector<8x128xf32>
    %50 = arith.mulf %49, %48 : vector<8x128xf32>
    %51 = arith.addf %45, %50 : vector<8x128xf32>
    %52 = vector.extract_strided_slice %22 {offsets = [0, 0], sizes = [8, 100], strides = [1, 1]} : vector<8x128xf32> to vector<8x100xf32>
    %c0_27 = arith.constant 0 : index
    %c0_28 = arith.constant 0 : index
    %53 = vector.load %arg10[%c0_27, %c0_28] : memref<8x100xf32, #tpu.memory_space<vmem>>, vector<8x100xf32>
    tpu.vector_store %arg10[%c0_27, %c0_28], %52 {strides = array<i32>} : memref<8x100xf32, #tpu.memory_space<vmem>>, vector<8x100xf32>,
    %54 = vector.extract_strided_slice %51 {offsets = [0, 100], sizes = [8, 20], strides = [1, 1]} : vector<8x128xf32> to vector<8x20xf32>
    %c0_29 = arith.constant 0 : index
    %c0_30 = arith.constant 0 : index
    %55 = vector.load %arg11[%c0_29, %c0_30] : memref<8x20xf32, #tpu.memory_space<vmem>>, vector<8x20xf32>
    tpu.vector_store %arg11[%c0_29, %c0_30], %54 {strides = array<i32>} : memref<8x20xf32, #tpu.memory_space<vmem>>, vector<8x20xf32>,
    return
  }
  func.func @transform_0(%arg0: i32) -> (i32, i32) {
    %c0_i32 = arith.constant 0 : i32
    %c0_i32_0 = arith.constant 0 : i32
    return %arg0, %c0_i32 : i32, i32
  }
  func.func @transform_1(%arg0: i32) -> (i32, i32) {
    %c0_i32 = arith.constant 0 : i32
    %c0_i32_0 = arith.constant 0 : i32
    return %arg0, %c0_i32 : i32, i32
  }
  func.func @transform_2(%arg0: i32) -> (i32, i32) {
    %c0_i32 = arith.constant 0 : i32
    %c0_i32_0 = arith.constant 0 : i32
    %c0_i32_1 = arith.constant 0 : i32
    return %c0_i32, %c0_i32_0 : i32, i32
  }
  func.func @transform_3(%arg0: i32) -> (i32, i32) {
    %c0_i32 = arith.constant 0 : i32
    %c0_i32_0 = arith.constant 0 : i32
    %c0_i32_1 = arith.constant 0 : i32
    return %c0_i32, %c0_i32_0 : i32, i32
  }
  func.func @transform_4(%arg0: i32) -> (i32, i32) {
    %c0_i32 = arith.constant 0 : i32
    %c0_i32_0 = arith.constant 0 : i32
    %c0_i32_1 = arith.constant 0 : i32
    return %c0_i32, %c0_i32_0 : i32, i32
  }
  func.func @transform_5(%arg0: i32) -> (i32, i32) {
    %c0_i32 = arith.constant 0 : i32
    %c0_i32_0 = arith.constant 0 : i32
    %c0_i32_1 = arith.constant 0 : i32
    return %c0_i32, %c0_i32_0 : i32, i32
  }
  func.func @transform_6(%arg0: i32) -> (i32, i32) {
    %c0_i32 = arith.constant 0 : i32
    %c0_i32_0 = arith.constant 0 : i32
    %c0_i32_1 = arith.constant 0 : i32
    return %c0_i32, %c0_i32_0 : i32, i32
  }
  func.func @transform_7(%arg0: i32) -> (i32, i32) {
    %c0_i32 = arith.constant 0 : i32
    %c0_i32_0 = arith.constant 0 : i32
    %c0_i32_1 = arith.constant 0 : i32
    return %c0_i32, %c0_i32_0 : i32, i32
  }
  func.func @transform_8(%arg0: i32) -> (i32, i32) {
    %c0_i32 = arith.constant 0 : i32
    %c0_i32_0 = arith.constant 0 : i32
    %c0_i32_1 = arith.constant 0 : i32
    return %c0_i32, %c0_i32_0 : i32, i32
  }
  func.func @transform_9(%arg0: i32) -> (i32, i32) {
    %c0_i32 = arith.constant 0 : i32
    %c0_i32_0 = arith.constant 0 : i32
    return %arg0, %c0_i32 : i32, i32
  }
  func.func @transform_10(%arg0: i32) -> (i32, i32) {
    %c0_i32 = arith.constant 0 : i32
    %c0_i32_0 = arith.constant 0 : i32
    return %arg0, %c0_i32 : i32, i32
  }
}

</mosaic_0001>

<bundles_post_ra>
// kernel: _lambda_.1
= control target key start
LH: loop header
LB: loop body
LE: loop exit
PB: predicated region body
PF: predicated region fallthrough
CT: control target
= control target key end

     0   :  { %v510_v20 = vmov 0.0   ;;  %vm511_vm0 = vmmov 0   ;;  %vm235_vm1 = vcmask 130048   ;;  %v512_v34 = vmov 0   ;;  %s514_s24 = smov 28   ;;  %s663_s2 = inlined_call_operand.vmem [shape: bf16[256,16], index: 2, kind: input, shape index: {}]   ;;  %s664_s0 = inlined_call_operand.vmem [shape: bf16[8,256], index: 0, kind: input, shape index: {}]   ;;  %s665_s4 = inlined_call_operand.vmem [shape: bf16[16,32], index: 4, kind: input, shape index: {}]   ;;  %s666_s6 = inlined_call_operand.vmem [shape: bf16[32,256], index: 6, kind: input, shape index: {}]   ;;  %s667_s3 = inlined_call_operand.vmem [shape: f32[1,16], index: 3, kind: input, shape index: {}]   ;;  %s668_s1 = inlined_call_operand.vmem [shape: f32[8,2], index: 1, kind: input, shape index: {}]   ;;  %s669_s5 = inlined_call_operand.vmem [shape: f32[1,32], index: 5, kind: input, shape index: {}]   ;;  %s670_s8 = inlined_call_operand.vmem [shape: f32[8,128], index: 8, kind: input, shape index: {}]   ;;  %s671_s7 = inlined_call_operand.vmem [shape: f32[1,256], index: 7, kind: input, shape index: {}]   ;;  %s672_s9 = inlined_call_operand.vmem [shape: f32[8,100], index: 9, kind: output, shape index: {0}]   ;;  %s673_s10 = inlined_call_operand.vmem [shape: f32[8,20], index: 10, kind: output, shape index: {1}]  }
   0x1   :  { %v483_v0 = vld [vmem:[%s663_s2 + $0x40] sm:$0xff]   ;;  %v485_v2 = vld [vmem:[%s663_s2 + $0x48] sm:$0xff]   ;;  %v487_v4 = vld [vmem:[%s663_s2 + $0x50] sm:$0xff]   ;;  %470 = vmatprep.subr.bf16.mxu1 %v510_v20  ;;  %472 = vmatprep.mubr.msk.bf16.mxu1 %vm511_vm0, %v510_v20  ;;  %v513_v36 = vmov 1   ;;  %vm317_vm2 = vcmask 261120   ;;  %v287_v45 = vlaneseq  ;;  %vm400_vm4 = vcmask 818176  }
   0x2   :  { %v484_v1 = vld [vmem:[%s663_s2] sm:$0xff]   ;;  %446 = vmatprep.subr.bf16.mxu0 %v483_v0  ;;  %v486_v3 = vld [vmem:[%s663_s2 + $0x8] sm:$0xff]   ;;  %v488_v5 = vld [vmem:[%s663_s2 + $0x10] sm:$0xff]   ;;  %481 = vset.pattern.permute.xlu0 %v512_v34  ;;  %vm406_vm6 = vcmask 162816  }
   0x3   :  { %447 = vmatpush3.bf16.msra.mxu0 %v484_v1  ;;  %v489_v6 = vld [vmem:[%s663_s2 + $0x58] sm:$0xff]   ;;  %v491_v8 = vld [vmem:[%s663_s2 + $0x60] sm:$0xff]   ;;  %v493_v10 = vld [vmem:[%s663_s2 + $0x68] sm:$0xff]   ;;  %v288_v47 = vshrl.u32 %v287_v45, 7 }
   0x4   :  { %448 = vmatprep.subr.bf16.mxu0 %v485_v2  ;;  %v490_v7 = vld [vmem:[%s663_s2 + $0x18] sm:$0xff]   ;;  %v492_v9 = vld [vmem:[%s663_s2 + $0x20] sm:$0xff]   ;;  %v494_v13 = vld [vmem:[%s663_s2 + $0x28] sm:$0xff]  }
   0x5   :  { %v35_v11 = vld [vmem:[%s664_s0] sm:$0xff]  ;;  %v495_v14 = vld [vmem:[%s663_s2 + $0x70] sm:$0xff]   ;;  %v497_v16 = vld [vmem:[%s663_s2 + $0x78] sm:$0xff]   ;;  %v289_v48 = vsub.s32 0, %v288_v47  ;;  %v293_v51 = vsub.s32 1, %v288_v47 }
   0x6   :  { %v418_v12 = vcombine.high %v35_v11, %v35_v11  ;;  %v496_v15 = vld [vmem:[%s663_s2 + $0x30] sm:$0xff]   ;;  %v498_v17 = vld [vmem:[%s663_s2 + $0x38] sm:$0xff]   ;;  %v417_v18 = vcombine.low %v35_v11, %v35_v11  ;;  %v501_v19 = vld [vmem:[%s665_s4] sm:$0xff]  }
   0x7   :  { %449 = vmatpush3.bf16.msra.mxu0 %v486_v3  ;;  %471 = vmatpush3.bf16.msra.mxu1 %v501_v19  ;;  %v504_v21 = vld [vmem:[%s666_s6 + $0x4] ss:$8 sps:$4 sm:$0xff]   ;;  %v416_v23 = vld [vmem:[%s667_s3] ss:$0 sm:$0xff]  ;;  %v507_v32 = vld [vmem:[%s666_s6 + $0x14] ss:$8 sps:$4 sm:$0xff]  }
   0x8   :  { %450 = vmatprep.subr.bf16.mxu0 %v487_v4  ;;  %210 = vmatprep.mubr.bf16.mxu0 %v418_v12  ;;  %v502_v30 = vld [vmem:[%s666_s6] ss:$8 sps:$4 sm:$0xff]   ;;  %v505_v33 = vld [vmem:[%s666_s6 + $0x10] ss:$8 sps:$4 sm:$0xff]  }
   0x9   :  { %321 = vmatprep.subr.bf16.mxu1 %v504_v21  ;;  %v365_v35 = vld [vmem:[%s668_s1] sm:$0xff] }
   0xa   :  { %375 = vperm.xlu0 %481, %v365_v35   ;;  %v435_v37 = vld [vmem:[%s669_s5] ss:$0 sm:$0xff]  ;;  %v364_v46 = vld [vmem:[%s670_s8 + $0x2] sm:$0x1] }
   0xb   :  { %451 = vmatpush3.bf16.msra.mxu0 %v488_v5  ;;  %vm366_vm3 = vcmp.gt.f32.partialorder %v364_v46, 0.5  ;;  %v285_v50 = vld [vmem:[%s671_s7] sm:$0x3] }
   0xc   :  { %452 = vmatprep.subr.bf16.mxu0 %v489_v6  ;;  %v367_v49 = vsel %vm366_vm3, 1, %v512_v34  ;;  %v290_v53 = vrot.slane %v285_v50, %v289_v48  ;;  %v294_v55 = vrot.slane %v285_v50, %v293_v51  ;;  %v443_v57 = vld [vmem:[%s670_s8] ss:$0 sm:$0xff]  ;;  %v445_v6 = vld [vmem:[%s670_s8 + $0x1] ss:$0 sm:$0xff] }
   0xd   :  { %v371_v54 = vrot.slane %v367_v49, %v289_v48 }
   0xe   :  { %482 = vset.pattern.permute.xlu0 %v513_v36 }
   0xf   :  { %453 = vmatpush3.bf16.msra.mxu0 %v490_v7  ;;  %379 = vperm.xlu0 %482, %v365_v35   ;;  %vm372_vm5 = vcmp.eq.s32.totalorder %v371_v54, 1 }
  0x10   :  { %454 = vmatprep.subr.bf16.mxu0 %v491_v8 }
  0x13   :  { %455 = vmatpush3.bf16.msra.mxu0 %v492_v9 }
  0x14   :  { %456 = vmatprep.subr.bf16.mxu0 %v493_v10 }
  0x17   :  { %457 = vmatpush3.bf16.msra.mxu0 %v494_v13 }
  0x18   :  { %458 = vmatprep.subr.bf16.mxu0 %v495_v14 }
  0x1b   :  { %459 = vmatpush3.bf16.msra.mxu0 %v496_v15 }
  0x1c   :  { %460 = vmatprep.subr.bf16.mxu0 %v497_v16 }
  0x1f   :  { %461 = vmatpush3.bf16.msra.mxu0 %v498_v17 }
  0x22   :  { %211 = vmatmul.mubr.bf16.vlgmr.msra.gmra.mrb[0].mxu0 %v417_v18 }
  0x89   :  { %v376_v52 = vpop.permute.xlu0 %375 }
  0x8e   :  { %v380_v60 = vpop.permute.xlu0 %379 }
  0x8f   :  { %v382_v2 = vsel %vm372_vm5, %v376_v52, %v380_v60 }
  0xf5   :  { %v462_v22 = vpop.f32.mrb[0].mxu0 }
  0xf6   :  { %v463_v24 = vpop.f32.mrb[1].mxu0 }
  0xf7   :  { %v464_v25 = vadd.f32 %v463_v24, %v462_v22  ;;  %v465_v26 = vpop.f32.mrb[2].mxu0 }
  0xf8   :  { %v466_v27 = vpop.f32.mrb[3].mxu0 }
  0xf9   :  { %v213_v28 = vadd.f32 %v464_v25, %v416_v23 }
  0xfb   :  { %v218_v29 = vmax.f32 %v213_v28, 0.0 }
  0xfd   :  { %v219_v31 = vpack.c.bf16 %v218_v29, %v218_v29 }
  0xff   :  { %473 = vmatmul.mubr.msk.bf16.vlgmr.msra.gmra.mrb[0].mxu1 %vm235_vm1, %v219_v31 }
 0x100   :  { %322 = vmatpush1.bf16.msra.mxu1 %v502_v30  ;;  %353 = vmatprep.mubr.bf16.mxu1 %v512_v34 }
 0x101   :  { %323 = vmatprep.subr.bf16.mxu1 %v507_v32 }
 0x104   :  { %324 = vmatpush1.bf16.msra.mxu1 %v505_v33 }
 0x1d2   :  { %v273_v38 = vpop.f32.mrb[0].mxu1 }
 0x1d3   :  { %v274_v39 = vadd.f32 %v435_v37, %v273_v38  ;;  %v474_v40 = vpop.f32.mrb[1].mxu1 }
 0x1d4   :  { %v276_v41 = vpop.f32.mrb[2].mxu1 }
 0x1d5   :  { %v279_v42 = vmax.f32 %v274_v39, 0.0  ;;  %v475_v43 = vpop.f32.mrb[3].mxu1 }
 0x1d7   :  { %v280_v44 = vpack.c.bf16 %v279_v42, %v279_v42 }
 0x1d9   :  { %442 = vmatmul.mubr.msk.bf16.vlgmr.msra.gmra.mrb[4].mxu1 %vm317_vm2, %v280_v44 }
 0x2ac   :  { %v355_v56 = vpop.f32.mrb[4].mxu1 }
 0x2ad   :  { %v356_v58 = vadd.f32 %v355_v56, %v290_v53  ;;  %v357_v59 = vpop.f32.mrb[5].mxu1 }
 0x2ae   :  { %v358_v61 = vadd.f32 %v357_v59, %v294_v55  ;;  %v359_v62 = vpop.f32.mrb[6].mxu1 }
 0x2af   :  { %v387_v63 = vmul.f32 %v443_v57, %v356_v58  ;;  %401 = vst.msk [vmem:[%s672_s9] sm:$0xff] %vm400_vm4, %v356_v58  ;;  %v360_v0 = vpop.f32.mrb[7].mxu1 }
 0x2b0   :  { %v391_v1 = vmin.f32 %v358_v61, 4.1351666 }
 0x2b1   :  { %v444_v3 = vclamps-f32 %v387_v63, 32.0 }
 0x2b2   :  { %v392_v4 = vmul.f32 1.442695, %v391_v1 }
 0x2b3   :  { %v390_v5 = vadd.f32 %v444_v3, %v382_v2 }
 0x2b4   :  { %508 = vpow2.f32 %v392_v4 }
 0x2be   :  { %v509_v7 = vpop.eup %508 }
 0x2bf   :  { %v398_v8 = vmul.f32 %v509_v7, %v445_v6 }
 0x2c1   :  { %v399_v9 = vadd.f32 %v398_v8, %v390_v5 }
 0x2c3   :  { %403 = vrot.lane.b32.xlu1 %v399_v9, %s514_s24 }
 0x335   :  { %v404_v10 = vpop.permute.xlu1 %403 }
 0x336   :  { %407 = vst.msk [vmem:[%s673_s10] sm:$0xff] %vm406_vm6, %v404_v10 }

</bundles_post_ra>
